<compile_context>
chip_gen: v6e
topology: v6e:2x2x1
jax: 0.10.0
libtpu: 0.0.40
codegen_flags: <defaults>
</compile_context>

<pallas_src>
import math
from functools import lru_cache

import numpy as np
import jax
import jax.numpy as jnp
from jax.experimental import pallas as pl
from jax.experimental.pallas import tpu as pltpu

PI = math.pi
TWO_PI = 2.0 * math.pi
HALF_PI = 0.5 * math.pi
QUARTER_PI = 0.25 * math.pi
TAN_PI_8 = 0.4142135623730951


def _round_up(x, m):
    return ((x + m - 1) // m) * m


# ---------------------------------------------------------------------------
# Hann-windowed DFT basis, zero padded to lane-dense 2*Fpad columns.
# columns [0:F)          -> real part
# columns [Fpad:Fpad+F)  -> imag part      (rest exactly zero)
# ---------------------------------------------------------------------------
@lru_cache(maxsize=None)
def _hann_dft_basis_np(n_fft: int, fpad: int):
    n = np.arange(n_fft)
    f = np.arange(n_fft // 2 + 1)
    win = 0.5 * (1.0 - np.cos(2.0 * np.pi * n / n_fft))          # periodic Hann
    ang = 2.0 * np.pi * np.outer(n, f) / n_fft
    basis = np.zeros((n_fft, 2 * fpad), np.float32)
    basis[:, : f.size] = win[:, None] * np.cos(ang)
    basis[:, fpad: fpad + f.size] = -(win[:, None] * np.sin(ang))
    return basis


# ---------------------------------------------------------------------------
# Kernel 1: STFT of one signal row.  Framing is done in-kernel from hop-sized
# chunks (frame f = chunks[f:f+4]) so no duplicated frame tensor exists.
# ---------------------------------------------------------------------------
def _stft_kernel(sig_ref, basis_ref, out_ref):
    # sig_ref  : (1, Tf+3, hop)      f32
    # basis_ref: (4, hop, 2*Fpad)    bf16
    # out_ref  : (1, Tf, 2*Fpad)     f32
    tf = out_ref.shape[1]
    acc = None
    for c in range(4):
        s = sig_ref[0, c:c + tf, :].astype(jnp.bfloat16)          # (Tf, hop)
        part = jnp.dot(s, basis_ref[c], preferred_element_type=jnp.float32)
        acc = part if acc is None else acc + part
    out_ref[0] = acc


def stft_all_rows(x2d, n_fft):
    """x2d: (R, T) f32  ->  spec (R, Tf, 2*Fpad) f32 (re | im), plus metadata."""
    assert n_fft % 4 == 0
    hop = n_fft // 4
    nfreq = n_fft // 2 + 1
    fpad = _round_up(nfreq, 128)
    R, T = x2d.shape

    pad = n_fft // 2
    xp = jnp.pad(x2d, ((0, 0), (pad, pad)), mode='reflect')       # center=True
    tpadded = T + 2 * pad
    tf = 1 + (tpadded - n_fft) // hop
    xp = xp[:, : (tf + 3) * hop]
    sig = xp.reshape(R, tf + 3, hop)                              # hop chunks

    basis = jnp.asarray(
        _hann_dft_basis_np(n_fft, fpad).reshape(4, hop, 2 * fpad), jnp.bfloat16)

    spec = pl.pallas_call(
        _stft_kernel,
        out_shape=jax.ShapeDtypeStruct((R, tf, 2 * fpad), jnp.float32),
        grid=(R,),
        in_specs=[pl.BlockSpec((1, tf + 3, hop), lambda i: (i, 0, 0)),
                  pl.BlockSpec((4, hop, 2 * fpad), lambda i: (0, 0, 0))],
        out_specs=pl.BlockSpec((1, tf, 2 * fpad), lambda i: (i, 0, 0)),
        compiler_params=pltpu.CompilerParams(
            dimension_semantics=("parallel",)),
    )(sig, basis)
    return spec, nfreq, fpad, tf


# ---------------------------------------------------------------------------
# Kernel 2: per-scale spectral + instantaneous-frequency partial sums.
# ---------------------------------------------------------------------------
def _wrap_phase(v):
    # torch-style ((v + pi) % (2*pi)) - pi
    return v - TWO_PI * jnp.floor((v + PI) / TWO_PI)


def _atan2(y, x):
    # Cephes-style atan2 built from VPU-safe ops (abs/min/max/div/mul/select).
    ax = jnp.abs(x)
    ay = jnp.abs(y)
    mx = jnp.maximum(ax, ay)
    mn = jnp.minimum(ax, ay)
    t = mn / jnp.maximum(mx, 1e-30)                 # in [0, 1]; atan2(0,0) -> 0
    hi = t > TAN_PI_8
    z = jnp.where(hi, (t - 1.0) / (t + 1.0), t)
    z2 = z * z
    p = ((8.05374449538e-2 * z2 - 1.38776856032e-1) * z2
         + 1.99777106478e-1) * z2 - 3.33329491539e-1
    r = z + z * z2 * p
    r = jnp.where(hi, QUARTER_PI + r, r)
    r = jnp.where(ay > ax, HALF_PI - r, r)
    r = jnp.where(x < 0.0, PI - r, r)
    return jnp.where(y < 0.0, -r, r)


def _make_distance_kernel(n_frames, fpad, weighted):
    def kernel(x_ref, y_ref, out_ref, carry_ref):
        # x_ref/y_ref: (1, tft, 2*fpad) f32 ;  out_ref: (1, 128) f32
        # carry_ref  : (2, fpad) f32  -- previous tile's last-frame phases
        jt = pl.program_id(1)
        tft = x_ref.shape[1]

        @pl.when(jt == 0)
        def _():
            out_ref[...] = jnp.zeros_like(out_ref)
            carry_ref[...] = jnp.zeros_like(carry_ref)

        x = x_ref[0]
        y = y_ref[0]
        xr, xi = x[:, :fpad], x[:, fpad:]
        yr, yi = y[:, :fpad], y[:, fpad:]

        x_abs = jnp.sqrt(xr * xr + xi * xi)
        y_abs = jnp.sqrt(yr * yr + yi * yi)

        # valid-frame mask (ragged last tile)
        frame = jt * tft + jax.lax.broadcasted_iota(jnp.int32, (tft, 1), 0)
        fmask = frame < n_frames

        d = x_abs - y_abs
        lin_num = jnp.sum(jnp.where(fmask, d * d, 0.0))
        lin_den = jnp.sum(jnp.where(fmask, x_abs * x_abs, 0.0))
        log_sum = jnp.sum(jnp.where(
            fmask, jnp.abs(jnp.log(1.0 + x_abs) - jnp.log(1.0 + y_abs)), 0.0))

        # instantaneous frequency: derivative(unwrap(angle)) ==
        # wrap(angle[t] - angle[t-1]) for pair index p = t-1 in [1, Tf-2].
        ang_x = _atan2(xi, xr)
        ang_y = _atan2(yi, yr)
        ax_ext = jnp.concatenate([carry_ref[0:1, :], ang_x], axis=0)
        ay_ext = jnp.concatenate([carry_ref[1:2, :], ang_y], axis=0)
        x_if = _wrap_phase(ax_ext[1:, :] - ax_ext[:-1, :])        # (tft, fpad)
        y_if = _wrap_phase(ay_ext[1:, :] - ay_ext[:-1, :])
        pd = x_if - y_if
        if weighted:
            # mask uses |X| at the later frame of each pair == this tile's row
            pd = pd * jnp.clip(jnp.log(1.0 + x_abs), 0.0, 1.0)
        pair = frame - 1
        pmask = (pair >= 1) & (pair <= n_frames - 2)
        phase_sum = jnp.sum(jnp.where(pmask, pd * pd, 0.0))

        # carry this tile's last-frame phases to the next tile of the same row
        carry_ref[0:1, :] = ang_x[tft - 1:tft, :]
        carry_ref[1:2, :] = ang_y[tft - 1:tft, :]

        # pack 4 partial sums into lanes 0..3 and accumulate in the resident
        # output block.
        lane = jax.lax.broadcasted_iota(jnp.int32, (1, 128), 1)
        packed = (jnp.where(lane == 0, lin_num, 0.0)
                  + jnp.where(lane == 1, lin_den, 0.0)
                  + jnp.where(lane == 2, log_sum, 0.0)
                  + jnp.where(lane == 3, phase_sum, 0.0))
        out_ref[...] += packed

    return kernel


def distance_sums(spec, bc, n_frames, fpad, weighted, tf_tile_max=256):
    # frame tile: full frame axis if small, else a multiple of 8 (ragged edge
    # handled by masks in the kernel).
    if n_frames <= tf_tile_max:
        tft = n_frames
    else:
        tft = (tf_tile_max // 8) * 8
    n_ft = pl.cdiv(n_frames, tft)

    out = pl.pallas_call(
        _make_distance_kernel(n_frames, fpad, weighted),
        out_shape=jax.ShapeDtypeStruct((bc, 128), jnp.float32),
        grid=(bc, n_ft),
        in_specs=[pl.BlockSpec((1, tft, 2 * fpad), lambda i, j: (i, j, 0)),
                  pl.BlockSpec((1, tft, 2 * fpad), lambda i, j: (i + bc, j, 0))],
        out_specs=pl.BlockSpec((1, 128), lambda i, j: (i, 0)),
        scratch_shapes=[pltpu.VMEM((2, fpad), jnp.float32)],
        compiler_params=pltpu.CompilerParams(
            dimension_semantics=("parallel", "arbitrary")),
    )(spec, spec)
    return jnp.sum(out[:, :4], axis=0)            # (4,)


# ---------------------------------------------------------------------------
# Top level: WeightedInstantaneousSpectralDistance.forward
# ---------------------------------------------------------------------------
def weighted_instantaneous_spectral_distance(target, pred, scales,
                                             weighted=False):
    b, c, t = target.shape
    bc = b * c
    # 'b c t -> (b c) t', target and pred share one STFT launch per scale.
    xy = jnp.concatenate([target.reshape(bc, t), pred.reshape(bc, t)],
                         axis=0).astype(jnp.float32)

    spectral_distance = jnp.float32(0.0)
    phase_distance = jnp.float32(0.0)
    for scale in scales:
        spec, nfreq, fpad, n_frames = stft_all_rows(xy, scale)
        sums = distance_sums(spec, bc, n_frames, fpad, weighted)
        n_all = bc * nfreq * n_frames
        n_if = bc * nfreq * (n_frames - 2)
        lin_distance = sums[0] / sums[1]          # relative L2 (counts cancel)
        log_distance = sums[2] / n_all            # L1 mean of log1p magnitudes
        phase_term = sums[3] / n_if               # L2 mean of inst. frequency
        spectral_distance = spectral_distance + lin_distance + log_distance
        phase_distance = phase_distance + phase_term

    return {'spectral_distance': spectral_distance,
            'phase_distance': phase_distance}


if __name__ == "__main__":
    key = jax.random.PRNGKey(0)
    k1, k2 = jax.random.split(key)
    B, C, T = 2, 1, 1024
    target = jax.random.normal(k1, (B, C, T), dtype=jnp.float32)
    pred = jax.random.normal(k2, (B, C, T), dtype=jnp.float32)
    scales = [64, 128]

    out = weighted_instantaneous_spectral_distance(target, pred, scales,
                                                   weighted=False)
    out_w = weighted_instantaneous_spectral_distance(target, pred, scales,
                                                     weighted=True)
    jax.block_until_ready((out, out_w))
    for o in (out, out_w):
        assert np.isfinite(float(o['spectral_distance']))
        assert np.isfinite(float(o['phase_distance']))
    print("KERNEL_OK")
</pallas_src>

<mosaic_0001>
module attributes {stable_mosaic.version = 11 : i64} {
  func.func @_stft_kernel(%arg0: i32, %arg1: memref<1x68x16xf32, #tpu.memory_space<vmem>>, %arg2: memref<4x16x256xbf16, #tpu.memory_space<vmem>>, %arg3: memref<1x65x256xf32, #tpu.memory_space<vmem>>) attributes {dimension_semantics = [#tpu.dimension_semantics<parallel>], iteration_bounds = array<i64: 4>, scalar_prefetch = 0 : i64, scratch_operands = 0 : i64, tpu.core_type = #tpu.core_type<tc>, window_params = [{transform_indices = @transform_0, window_bounds = array<i64: 1, 68, 16>}, {pipeline_mode = #tpu.pipeline_mode<synchronous>, transform_indices = @transform_1, window_bounds = array<i64: 4, 16, 256>}, {transform_indices = @transform_2, window_bounds = array<i64: 1, 65, 256>}]} {
    %c0 = arith.constant 0 : index
    %c0_0 = arith.constant 0 : index
    %c0_1 = arith.constant 0 : index
    %0 = vector.load %arg1[%c0, %c0_0, %c0_1] : memref<1x68x16xf32, #tpu.memory_space<vmem>>, vector<1x65x16xf32>
    %1 = vector.shape_cast %0 : vector<1x65x16xf32> to vector<65x16xf32>
    %2 = arith.truncf %1 : vector<65x16xf32> to vector<65x16xbf16>
    %c0_2 = arith.constant 0 : index
    %c0_3 = arith.constant 0 : index
    %c0_4 = arith.constant 0 : index
    %3 = vector.load %arg2[%c0_2, %c0_3, %c0_4] : memref<4x16x256xbf16, #tpu.memory_space<vmem>>, vector<1x16x256xbf16>
    %4 = vector.shape_cast %3 : vector<1x16x256xbf16> to vector<16x256xbf16>
    %cst = arith.constant dense<0.000000e+00> : vector<65x256xf32>
    %5 = tpu.matmul %2, %4, %cst {dimension_numbers = #tpu.dot_dimension_numbers<[1], [0], [0], [1], [0, 0, 1, 1], [], []>} : vector<65x16xbf16>, vector<16x256xbf16>, vector<65x256xf32> -> vector<65x256xf32>
    %c0_5 = arith.constant 0 : index
    %c1 = arith.constant 1 : index
    %c0_6 = arith.constant 0 : index
    %6 = vector.load %arg1[%c0_5, %c1, %c0_6] : memref<1x68x16xf32, #tpu.memory_space<vmem>>, vector<1x65x16xf32>
    %7 = vector.shape_cast %6 : vector<1x65x16xf32> to vector<65x16xf32>
    %8 = arith.truncf %7 : vector<65x16xf32> to vector<65x16xbf16>
    %c1_7 = arith.constant 1 : index
    %c0_8 = arith.constant 0 : index
    %c0_9 = arith.constant 0 : index
    %9 = vector.load %arg2[%c1_7, %c0_8, %c0_9] : memref<4x16x256xbf16, #tpu.memory_space<vmem>>, vector<1x16x256xbf16>
    %10 = vector.shape_cast %9 : vector<1x16x256xbf16> to vector<16x256xbf16>
    %cst_10 = arith.constant dense<0.000000e+00> : vector<65x256xf32>
    %11 = tpu.matmul %8, %10, %cst_10 {dimension_numbers = #tpu.dot_dimension_numbers<[1], [0], [0], [1], [0, 0, 1, 1], [], []>} : vector<65x16xbf16>, vector<16x256xbf16>, vector<65x256xf32> -> vector<65x256xf32>
    %12 = arith.addf %5, %11 : vector<65x256xf32>
    %c0_11 = arith.constant 0 : index
    %c2 = arith.constant 2 : index
    %c0_12 = arith.constant 0 : index
    %13 = vector.load %arg1[%c0_11, %c2, %c0_12] : memref<1x68x16xf32, #tpu.memory_space<vmem>>, vector<1x65x16xf32>
    %14 = vector.shape_cast %13 : vector<1x65x16xf32> to vector<65x16xf32>
    %15 = arith.truncf %14 : vector<65x16xf32> to vector<65x16xbf16>
    %c2_13 = arith.constant 2 : index
    %c0_14 = arith.constant 0 : index
    %c0_15 = arith.constant 0 : index
    %16 = vector.load %arg2[%c2_13, %c0_14, %c0_15] : memref<4x16x256xbf16, #tpu.memory_space<vmem>>, vector<1x16x256xbf16>
    %17 = vector.shape_cast %16 : vector<1x16x256xbf16> to vector<16x256xbf16>
    %cst_16 = arith.constant dense<0.000000e+00> : vector<65x256xf32>
    %18 = tpu.matmul %15, %17, %cst_16 {dimension_numbers = #tpu.dot_dimension_numbers<[1], [0], [0], [1], [0, 0, 1, 1], [], []>} : vector<65x16xbf16>, vector<16x256xbf16>, vector<65x256xf32> -> vector<65x256xf32>
    %19 = arith.addf %12, %18 : vector<65x256xf32>
    %c0_17 = arith.constant 0 : index
    %c3 = arith.constant 3 : index
    %c0_18 = arith.constant 0 : index
    %20 = vector.load %arg1[%c0_17, %c3, %c0_18] : memref<1x68x16xf32, #tpu.memory_space<vmem>>, vector<1x65x16xf32>
    %21 = vector.shape_cast %20 : vector<1x65x16xf32> to vector<65x16xf32>
    %22 = arith.truncf %21 : vector<65x16xf32> to vector<65x16xbf16>
    %c3_19 = arith.constant 3 : index
    %c0_20 = arith.constant 0 : index
    %c0_21 = arith.constant 0 : index
    %23 = vector.load %arg2[%c3_19, %c0_20, %c0_21] : memref<4x16x256xbf16, #tpu.memory_space<vmem>>, vector<1x16x256xbf16>
    %24 = vector.shape_cast %23 : vector<1x16x256xbf16> to vector<16x256xbf16>
    %cst_22 = arith.constant dense<0.000000e+00> : vector<65x256xf32>
    %25 = tpu.matmul %22, %24, %cst_22 {dimension_numbers = #tpu.dot_dimension_numbers<[1], [0], [0], [1], [0, 0, 1, 1], [], []>} : vector<65x16xbf16>, vector<16x256xbf16>, vector<65x256xf32> -> vector<65x256xf32>
    %26 = arith.addf %19, %25 : vector<65x256xf32>
    %c0_23 = arith.constant 0 : index
    %c0_24 = arith.constant 0 : index
    %c0_25 = arith.constant 0 : index
    %27 = vector.load %arg3[%c0_23, %c0_24, %c0_25] : memref<1x65x256xf32, #tpu.memory_space<vmem>>, vector<1x65x256xf32>
    %28 = vector.shape_cast %27 : vector<1x65x256xf32> to vector<65x256xf32>
    %29 = vector.shape_cast %26 : vector<65x256xf32> to vector<1x65x256xf32>
    tpu.vector_store %arg3[%c0_23, %c0_24, %c0_25], %29 {strides = array<i32>} : memref<1x65x256xf32, #tpu.memory_space<vmem>>, vector<1x65x256xf32>,
    return
  }
  func.func @transform_0(%arg0: i32) -> (i32, i32, i32) {
    %c0_i32 = arith.constant 0 : i32
    %c0_i32_0 = arith.constant 0 : i32
    %c0_i32_1 = arith.constant 0 : i32
    return %arg0, %c0_i32, %c0_i32_0 : i32, i32, i32
  }
  func.func @transform_1(%arg0: i32) -> (i32, i32, i32) {
    %c0_i32 = arith.constant 0 : i32
    %c0_i32_0 = arith.constant 0 : i32
    %c0_i32_1 = arith.constant 0 : i32
    %c0_i32_2 = arith.constant 0 : i32
    return %c0_i32, %c0_i32_0, %c0_i32_1 : i32, i32, i32
  }
  func.func @transform_2(%arg0: i32) -> (i32, i32, i32) {
    %c0_i32 = arith.constant 0 : i32
    %c0_i32_0 = arith.constant 0 : i32
    %c0_i32_1 = arith.constant 0 : i32
    return %arg0, %c0_i32, %c0_i32_0 : i32, i32, i32
  }
}

</mosaic_0001>

<bundles_post_ra>
// kernel: tpu_custom_call.1
= control target key start
LH: loop header
LB: loop body
LE: loop exit
PB: predicated region body
PF: predicated region fallthrough
CT: control target
= control target key end

     0   :  { %s836_s9 = smov 0   ;;  %s1042_s0 = inlined_call_operand.vmem [shape: f32[4,68,16], index: 0, kind: input, shape index: {}]   ;;  %s1043_s1 = inlined_call_operand.vmem [shape: bf16[4,16,256], index: 1, kind: input, shape index: {}]   ;;  %s1044_s2 = inlined_call_operand.vmem [shape: f32[4,65,256], index: 2, kind: output, shape index: {}]  }
   0x1 LB: > { %s746_s10 = sadd.s32 4294967295, %s818_s9   ;;  %p750_p0 = scmp.ge.s32.totalorder %s818_s9, 1  ;;  %s818_s9 = sphi %s836_s9, %s12_s9  }
   0x2   : > { %p112_p1 = scmp.lt.s32.totalorder %s818_s9, 5 }
   0x4   : > { %p113_p2 = pnand %p750_p0, %p112_p1 }
   0x5   : > { %p134_p3 = scmp.lt.s32.totalorder (!%p113_p2), %s746_s10, 3 }
   0x6   : > { %116 = sbr.rel (%p113_p2) target bundleno = 290 (0x122), region = 28 }
   0xb   : > { %v800_v0 = vld [vmem:[%s1043_s1 + $0x14] ss:$8 sps:$4 sm:$0xff]   ;;  %v802_v1 = vld [vmem:[%s1043_s1 + $0x10] ss:$8 sps:$4 sm:$0xff]   ;;  %v820_v2 = vmov 0   ;;  %s1046_s10 = smov (!%p134_p3, %s746_s10), 3 }
   0xc   : > { %236 = vmatprep.mubr.bf16.mxu0 %v820_v2  ;;  %342 = vmatprep.mubr.bf16.mxu1 %v820_v2  ;;  %v803_v3 = vld [vmem:[%s1043_s1 + $0x4] ss:$8 sps:$4 sm:$0xff]   ;;  %v805_v4 = vld [vmem:[%s1043_s1] ss:$8 sps:$4 sm:$0xff]   ;;  %s789_s21 = smul.u32 72, %s1046_s10  ;;  %vm188_vm0 = vcmask 130048  }
   0xd   : > { %218 = vmatprep.subr.bf16.mxu0 %v800_v0  ;;  %v808_v5 = vld [vmem:[%s1043_s1 + $0x24] ss:$8 sps:$4 sm:$0xff]   ;;  %324 = vmatprep.subr.bf16.mxu1 %v803_v3  ;;  %v811_v6 = vld [vmem:[%s1043_s1 + $0x34] ss:$8 sps:$4 sm:$0xff]   ;;  %v806_v7 = vld [vmem:[%s1043_s1 + $0x20] ss:$8 sps:$4 sm:$0xff]  }
   0xe   : > { %219 = vmatpush1.bf16.msra.mxu0 %v802_v1  ;;  %325 = vmatpush1.bf16.msra.mxu1 %v805_v4  ;;  %s873_s28 = scalar_lea.vmem %s1042_s0, %s789_s21  ;;  %v809_v13 = vld [vmem:[%s1043_s1 + $0x30] ss:$8 sps:$4 sm:$0xff]   ;;  %s790_s3 = smul.u32 144, %s1046_s10 }
   0xf   : > { %447 = vmatprep.subr.bf16.mxu0 %v808_v5  ;;  %v161_v8 = vld [vmem:[%s873_s28 + $0x1] sm:$0xff]  ;;  %v162_v9 = vld [vmem:[%s873_s28 + $0x9] sm:$0xff]  ;;  %588 = vmatprep.subr.bf16.mxu1 %v811_v6  ;;  %v163_v15 = vld [vmem:[%s873_s28 + $0x11] sm:$0xff] }
  0x10   : > { %v145_v10 = vld [vmem:[%s873_s28] sm:$0xff]  ;;  %v170_v11 = vpack.c.bf16 %v162_v9, %v161_v8  ;;  %v146_v12 = vld [vmem:[%s873_s28 + $0x8] sm:$0xff]  ;;  %v147_v17 = vld [vmem:[%s873_s28 + $0x10] sm:$0xff]  ;;  %s998_s6 = scalar_lea.vmem %s1044_s2, %s790_s3 }
  0x11   : > { %v154_v14 = vpack.c.bf16 %v146_v12, %v145_v10  ;;  %v164_v16 = vld [vmem:[%s873_s28 + $0x19] sm:$0xff]  ;;  %v165_v21 = vld [vmem:[%s873_s28 + $0x21] sm:$0xff]  ;;  %v166_v22 = vld [vmem:[%s873_s28 + $0x29] sm:$0xff] }
  0x12   : > { %757 = vmatmul.mubr.msk.bf16.vlgmr.msra.gmra.mxu0 %vm188_vm0, %v170_v11  ;;  %v148_v18 = vld [vmem:[%s873_s28 + $0x18] sm:$0xff]  ;;  %v171_v19 = vpack.c.bf16 %v164_v16, %v163_v15  ;;  %v149_v23 = vld [vmem:[%s873_s28 + $0x20] sm:$0xff]  ;;  %v150_v24 = vld [vmem:[%s873_s28 + $0x28] sm:$0xff]  ;;  %v172_v25 = vpack.c.bf16 %v166_v22, %v165_v21 }
  0x13   : > { %764 = vmatmul.mubr.msk.bf16.vlgmr.msra.gmra.mxu1 %vm188_vm0, %v154_v14  ;;  %448 = vmatpush1.bf16.msra.mxu0 %v806_v7  ;;  %v155_v20 = vpack.c.bf16 %v148_v18, %v147_v17  ;;  %v156_v26 = vpack.c.bf16 %v150_v24, %v149_v23  ;;  %v167_v27 = vld [vmem:[%s873_s28 + $0x31] sm:$0xff]  ;;  %v168_v28 = vld [vmem:[%s873_s28 + $0x39] sm:$0xff]  ;;  %v169_v33 = vld [vmem:[%s873_s28 + $0x41] sm:$0x1] }
  0x14   : > { %589 = vmatpush1.bf16.msra.mxu1 %v809_v13  ;;  %246 = vmatprep.mubr.bf16.mxu0 %v820_v2  ;;  %v151_v29 = vld [vmem:[%s873_s28 + $0x30] sm:$0xff]  ;;  %v152_v30 = vld [vmem:[%s873_s28 + $0x38] sm:$0xff]  ;;  %v173_v31 = vpack.c.bf16 %v168_v28, %v167_v27  ;;  %v153_v34 = vld [vmem:[%s873_s28 + $0x40] sm:$0x1]  ;;  %v174_v35 = vpack.c.bf16 %v169_v33, %v169_v33 }
  0x15   : > { %352 = vmatprep.mubr.bf16.mxu1 %v820_v2  ;;  %v157_v32 = vpack.c.bf16 %v152_v30, %v151_v29  ;;  %v158_v36 = vpack.c.bf16 %v153_v34, %v153_v34  ;;  %v391_v37 = vld [vmem:[%s873_s28 + $0x2] sm:$0xff]  ;;  %v392_v38 = vld [vmem:[%s873_s28 + $0xa] sm:$0xff]  ;;  %v393_v43 = vld [vmem:[%s873_s28 + $0x12] sm:$0xff] }
  0x16   : > { %v532_v39 = vld [vmem:[%s873_s28 + $0x3] sm:$0xff]  ;;  %v533_v40 = vld [vmem:[%s873_s28 + $0xb] sm:$0xff]  ;;  %v400_v41 = vpack.c.bf16 %v392_v38, %v391_v37  ;;  %v394_v44 = vld [vmem:[%s873_s28 + $0x1a] sm:$0xff] }
  0x17   : > { %v541_v42 = vpack.c.bf16 %v533_v40, %v532_v39  ;;  %v534_v45 = vld [vmem:[%s873_s28 + $0x13] sm:$0xff]  ;;  %v535_v46 = vld [vmem:[%s873_s28 + $0x1b] sm:$0xff]  ;;  %v401_v47 = vpack.c.bf16 %v394_v44, %v393_v43  ;;  %v396_v50 = vld [vmem:[%s873_s28 + $0x2a] sm:$0xff] }
  0x18   : > { %v542_v48 = vpack.c.bf16 %v535_v46, %v534_v45  ;;  %v395_v49 = vld [vmem:[%s873_s28 + $0x22] sm:$0xff]  ;;  %v537_v52 = vld [vmem:[%s873_s28 + $0x2b] sm:$0xff]  ;;  %v398_v56 = vld [vmem:[%s873_s28 + $0x3a] sm:$0xff] }
  0x19   : > { %v536_v51 = vld [vmem:[%s873_s28 + $0x23] sm:$0xff]  ;;  %v402_v53 = vpack.c.bf16 %v396_v50, %v395_v49  ;;  %v397_v55 = vld [vmem:[%s873_s28 + $0x32] sm:$0xff]  ;;  %v539_v58 = vld [vmem:[%s873_s28 + $0x3b] sm:$0xff] }
  0x1a   : > { %758 = vmatmul.mubr.msk.bf16.gmra.mxu0 %vm188_vm0, %v171_v19  ;;  %v543_v54 = vpack.c.bf16 %v537_v52, %v536_v51  ;;  %v538_v57 = vld [vmem:[%s873_s28 + $0x33] sm:$0xff]  ;;  %v403_v59 = vpack.c.bf16 %v398_v56, %v397_v55  ;;  %v399_v61 = vld [vmem:[%s873_s28 + $0x42] sm:$0x1]  ;;  %v540_v62 = vld [vmem:[%s873_s28 + $0x43] sm:$0x1] }
  0x1b   : > { %765 = vmatmul.mubr.msk.bf16.gmra.mxu1 %vm188_vm0, %v155_v20  ;;  %256 = vmatprep.mubr.bf16.mxu0 %v820_v2  ;;  %v544_v60 = vpack.c.bf16 %v539_v58, %v538_v57  ;;  %v404_v63 = vpack.c.bf16 %v399_v61, %v399_v61  ;;  %v545_v0 = vpack.c.bf16 %v540_v62, %v540_v62 }
  0x1c   : > { %362 = vmatprep.mubr.bf16.mxu1 %v820_v2 }
  0x22   : > { %759 = vmatmul.mubr.msk.bf16.gmra.mxu0 %vm188_vm0, %v172_v25 }
  0x23   : > { %766 = vmatmul.mubr.msk.bf16.gmra.mxu1 %vm188_vm0, %v156_v26  ;;  %266 = vmatprep.mubr.bf16.mxu0 %v820_v2 }
  0x24   : > { %372 = vmatprep.mubr.bf16.mxu1 %v820_v2 }
  0x2a   : > { %760 = vmatmul.mubr.msk.bf16.gmra.mxu0 %vm188_vm0, %v173_v31 }
  0x2b   : > { %767 = vmatmul.mubr.msk.bf16.gmra.mxu1 %vm188_vm0, %v157_v32  ;;  %276 = vmatprep.mubr.bf16.mxu0 %v820_v2 }
  0x2c   : > { %382 = vmatprep.mubr.bf16.mxu1 %v820_v2 }
  0x32   : > { %761 = vmatmul.mubr.msk.bf16.gmra.mxu0 %vm188_vm0, %v174_v35 }
  0x33   : > { %768 = vmatmul.mubr.msk.bf16.gmra.mxu1 %vm188_vm0, %v158_v36  ;;  %465 = vmatprep.mubr.bf16.mxu0 %v820_v2 }
  0x34   : > { %606 = vmatprep.mubr.bf16.mxu1 %v820_v2 }
  0x3a   : > { %773 = vmatmul.mubr.msk.bf16.vlgmr.msra.gmra.mxu0 %vm188_vm0, %v400_v41 }
  0x3b   : > { %782 = vmatmul.mubr.msk.bf16.vlgmr.msra.gmra.mxu1 %vm188_vm0, %v541_v42  ;;  %475 = vmatprep.mubr.bf16.mxu0 %v820_v2 }
  0x3c   : > { %616 = vmatprep.mubr.bf16.mxu1 %v820_v2 }
  0x42   : > { %774 = vmatmul.mubr.msk.bf16.gmra.mxu0 %vm188_vm0, %v401_v47 }
  0x43   : > { %783 = vmatmul.mubr.msk.bf16.gmra.mxu1 %vm188_vm0, %v542_v48  ;;  %485 = vmatprep.mubr.bf16.mxu0 %v820_v2 }
  0x44   : > { %626 = vmatprep.mubr.bf16.mxu1 %v820_v2 }
  0x4a   : > { %775 = vmatmul.mubr.msk.bf16.gmra.mxu0 %vm188_vm0, %v402_v53 }
  0x4b   : > { %784 = vmatmul.mubr.msk.bf16.gmra.mxu1 %vm188_vm0, %v543_v54  ;;  %495 = vmatprep.mubr.bf16.mxu0 %v820_v2 }
  0x4c   : > { %636 = vmatprep.mubr.bf16.mxu1 %v820_v2 }
  0x52   : > { %776 = vmatmul.mubr.msk.bf16.gmra.mxu0 %vm188_vm0, %v403_v59 }
  0x53   : > { %785 = vmatmul.mubr.msk.bf16.gmra.mxu1 %vm188_vm0, %v544_v60  ;;  %505 = vmatprep.mubr.bf16.mxu0 %v820_v2 }
  0x54   : > { %646 = vmatprep.mubr.bf16.mxu1 %v820_v2 }
  0x5a   : > { %777 = vmatmul.mubr.msk.bf16.gmra.mxu0 %vm188_vm0, %v404_v63 }
  0x5b   : > { %786 = vmatmul.mubr.msk.bf16.gmra.mxu1 %vm188_vm0, %v545_v0 }
  0xd2   : > { %v238_v1 = vpop.f32.mrf.mxu0 }
  0xd3   : > { %v344_v3 = vpop.f32.mrf.mxu1 }
  0xd4   : > { %v240_v4 = vpop.f32.mrf.mxu0  ;;  %v345_v40 = vadd.f32 %v344_v3, %v238_v1 }
  0xd5   : > { %v346_v5 = vpop.f32.mrf.mxu1 }
  0xd6   : > { %v242_v6 = vpop.f32.mrf.mxu0  ;;  %v347_v43 = vadd.f32 %v346_v5, %v240_v4 }
  0xd7   : > { %v348_v7 = vpop.f32.mrf.mxu1 }
  0xd8   : > { %v244_v8 = vpop.f32.mrf.mxu0  ;;  %v349_v47 = vadd.f32 %v348_v7, %v242_v6 }
  0xd9   : > { %v350_v9 = vpop.f32.mrf.mxu1 }
  0xda   : > { %v248_v10 = vpop.f32.mrf.mxu0  ;;  %v351_v52 = vadd.f32 %v350_v9, %v244_v8 }
  0xdb   : > { %v354_v11 = vpop.f32.mrf.mxu1 }
  0xdc   : > { %v250_v12 = vpop.f32.mrf.mxu0  ;;  %v355_v57 = vadd.f32 %v354_v11, %v248_v10 }
  0xdd   : > { %v356_v13 = vpop.f32.mrf.mxu1 }
  0xde   : > { %v252_v2 = vpop.f32.mrf.mxu0  ;;  %v357_v62 = vadd.f32 %v356_v13, %v250_v12 }
  0xdf   : > { %v358_v14 = vpop.f32.mrf.mxu1 }
  0xe0   : > { %v952_v15 = vpop.f32.mrf.mxu0  ;;  %v359_v4 = vadd.f32 %v358_v14, %v252_v2 }
  0xe1   : > { %v360_v16 = vpop.f32.mrf.mxu1 }
  0xe2   : > { %v954_v17 = vpop.f32.mrf.mxu0  ;;  %v361_v9 = vadd.f32 %v360_v16, %v952_v15 }
  0xe3   : > { %v956_v18 = vpop.f32.mrf.mxu1 }
  0xe4   : > { %v958_v19 = vpop.f32.mrf.mxu0 }
  0xe5   : > { %v960_v20 = vpop.f32.mrf.mxu1 }
  0xe6   : > { %v962_v21 = vpop.f32.mrf.mxu0 }
  0xe7   : > { %v964_v22 = vpop.f32.mrf.mxu1 }
  0xe8   : > { %v966_v23 = vpop.f32.mrf.mxu0 }
  0xe9   : > { %v968_v24 = vpop.f32.mrf.mxu1 }
  0xea   : > { %v970_v25 = vpop.f32.mrf.mxu0 }
  0xeb   : > { %v972_v26 = vpop.f32.mrf.mxu1 }
  0xec   : > { %v974_v27 = vpop.f32.mrf.mxu0 }
  0xed   : > { %v976_v28 = vpop.f32.mrf.mxu1 }
  0xee   : > { %v978_v29 = vpop.f32.mrf.mxu0 }
  0xef   : > { %v980_v30 = vpop.f32.mrf.mxu1 }
  0xf0   : > { %v982_v31 = vpop.f32.mrf.mxu0 }
  0xf1   : > { %v984_v32 = vpop.f32.mrf.mxu1 }
  0xf2   : > { %v986_v33 = vpop.f32.mrf.mxu0 }
  0xf3   : > { %v988_v34 = vpop.f32.mrf.mxu1 }
  0xf4   : > { %v990_v35 = vpop.f32.mrf.mxu0 }
  0xf5   : > { %v992_v36 = vpop.f32.mrf.mxu1 }
  0xf6   : > { %v282_v37 = vpop.f32.mrf.mxu0 }
  0xf7   : > { %v388_v38 = vpop.f32.mrf.mxu1  ;;  %v365_v37 = vadd.f32 %v956_v18, %v954_v17 }
  0xf8   : > { %v283_v39 = vpop.f32.mrf.mxu0 }
  0xf9   : > { %v389_v41 = vpop.f32.mrf.mxu1 }
  0xfa   : > { %v467_v42 = vpop.f32.mrf.mxu0 }
  0xfb   : > { %v514_v44 = vadd.f32 %v467_v42, %v345_v40  ;;  %v608_v45 = vpop.f32.mrf.mxu1  ;;  %v367_v40 = vadd.f32 %v960_v20, %v958_v19 }
  0xfc   : > { %v469_v46 = vpop.f32.mrf.mxu0 }
  0xfd   : > { %v655_v48 = vadd.f32 %v608_v45, %v514_v44  ;;  %v515_v49 = vadd.f32 %v469_v46, %v347_v43  ;;  %v610_v50 = vpop.f32.mrf.mxu1  ;;  %v369_v43 = vadd.f32 %v964_v22, %v962_v21  ;;  %v371_v46 = vadd.f32 %v968_v24, %v966_v23 }
  0xfe   : > { %v471_v51 = vpop.f32.mrf.mxu0 }
  0xff   : > { %673 = vst [vmem:[%s998_s6] sm:$0xff] %v655_v48  ;;  %v656_v53 = vadd.f32 %v610_v50, %v515_v49  ;;  %v516_v54 = vadd.f32 %v471_v51, %v349_v47  ;;  %v612_v55 = vpop.f32.mrf.mxu1  ;;  %v375_v49 = vadd.f32 %v972_v26, %v970_v25 }
 0x100   : > { %v473_v56 = vpop.f32.mrf.mxu0 }
 0x101   : > { %674 = vst [vmem:[%s998_s6 + $0x8] sm:$0xff] %v656_v53  ;;  %v657_v58 = vadd.f32 %v612_v55, %v516_v54  ;;  %v517_v59 = vadd.f32 %v473_v56, %v351_v52  ;;  %v614_v60 = vpop.f32.mrf.mxu1  ;;  %v377_v52 = vadd.f32 %v976_v28, %v974_v27  ;;  %v379_v55 = vadd.f32 %v980_v30, %v978_v29 }
 0x102   : > { %v477_v61 = vpop.f32.mrf.mxu0 }
 0x103   : > { %675 = vst [vmem:[%s998_s6 + $0x10] sm:$0xff] %v657_v58  ;;  %v658_v63 = vadd.f32 %v614_v60, %v517_v59  ;;  %v518_v0 = vadd.f32 %v477_v61, %v355_v57  ;;  %v618_v1 = vpop.f32.mrf.mxu1  ;;  %v381_v58 = vadd.f32 %v984_v32, %v982_v31  ;;  %v385_v61 = vadd.f32 %v988_v34, %v986_v33 }
 0x104   : > { %v479_v3 = vpop.f32.mrf.mxu0 }
 0x105   : > { %676 = vst [vmem:[%s998_s6 + $0x18] sm:$0xff] %v658_v63  ;;  %v659_v5 = vadd.f32 %v618_v1, %v518_v0  ;;  %v519_v6 = vadd.f32 %v479_v3, %v357_v62  ;;  %v620_v7 = vpop.f32.mrf.mxu1  ;;  %v387_v0 = vadd.f32 %v992_v36, %v990_v35 }
 0x106   : > { %v481_v8 = vpop.f32.mrf.mxu0 }
 0x107   : > { %677 = vst [vmem:[%s998_s6 + $0x20] sm:$0xff] %v659_v5  ;;  %v660_v10 = vadd.f32 %v620_v7, %v519_v6  ;;  %v520_v11 = vadd.f32 %v481_v8, %v359_v4  ;;  %v622_v12 = vpop.f32.mrf.mxu1 }
 0x108   : > { %v483_v13 = vpop.f32.mrf.mxu0 }
 0x109   : > { %678 = vst [vmem:[%s998_s6 + $0x28] sm:$0xff] %v660_v10  ;;  %v661_v38 = vadd.f32 %v622_v12, %v520_v11  ;;  %v521_v2 = vadd.f32 %v483_v13, %v361_v9  ;;  %v624_v14 = vpop.f32.mrf.mxu1 }
 0x10a   : > { %v487_v39 = vpop.f32.mrf.mxu0 }
 0x10b   : > { %679 = vst [vmem:[%s998_s6 + $0x30] sm:$0xff] %v661_v38  ;;  %v662_v15 = vadd.f32 %v624_v14, %v521_v2  ;;  %v522_v16 = vadd.f32 %v487_v39, %v365_v37  ;;  %v628_v41 = vpop.f32.mrf.mxu1 }
 0x10c   : > { %v489_v42 = vpop.f32.mrf.mxu0 }
 0x10d   : > { %680 = vst [vmem:[%s998_s6 + $0x38] sm:$0xff] %v662_v15  ;;  %v663_v17 = vadd.f32 %v628_v41, %v522_v16  ;;  %v523_v18 = vadd.f32 %v489_v42, %v367_v40  ;;  %v630_v44 = vpop.f32.mrf.mxu1 }
 0x10e   : > { %v491_v45 = vpop.f32.mrf.mxu0 }
 0x10f   : > { %681 = vst [vmem:[%s998_s6 + $0x40] sm:$0xff] %v663_v17  ;;  %v664_v19 = vadd.f32 %v630_v44, %v523_v18  ;;  %v524_v20 = vadd.f32 %v491_v45, %v369_v43  ;;  %v632_v47 = vpop.f32.mrf.mxu1 }
 0x110   : > { %v493_v48 = vpop.f32.mrf.mxu0 }
 0x111   : > { %682 = vst [vmem:[%s998_s6 + $0x48] sm:$0xff] %v664_v19  ;;  %v665_v21 = vadd.f32 %v632_v47, %v524_v20  ;;  %v525_v22 = vadd.f32 %v493_v48, %v371_v46  ;;  %v634_v50 = vpop.f32.mrf.mxu1 }
 0x112   : > { %v497_v51 = vpop.f32.mrf.mxu0 }
 0x113   : > { %683 = vst [vmem:[%s998_s6 + $0x50] sm:$0xff] %v665_v21  ;;  %v666_v23 = vadd.f32 %v634_v50, %v525_v22  ;;  %v526_v24 = vadd.f32 %v497_v51, %v375_v49  ;;  %v638_v53 = vpop.f32.mrf.mxu1 }
 0x114   : > { %v499_v54 = vpop.f32.mrf.mxu0 }
 0x115   : > { %684 = vst [vmem:[%s998_s6 + $0x58] sm:$0xff] %v666_v23  ;;  %v667_v25 = vadd.f32 %v638_v53, %v526_v24  ;;  %v527_v26 = vadd.f32 %v499_v54, %v377_v52  ;;  %v640_v56 = vpop.f32.mrf.mxu1 }
 0x116   : > { %v501_v57 = vpop.f32.mrf.mxu0 }
 0x117   : > { %685 = vst [vmem:[%s998_s6 + $0x60] sm:$0xff] %v667_v25  ;;  %v668_v27 = vadd.f32 %v640_v56, %v527_v26  ;;  %v528_v28 = vadd.f32 %v501_v57, %v379_v55  ;;  %v642_v59 = vpop.f32.mrf.mxu1 }
 0x118   : > { %v503_v60 = vpop.f32.mrf.mxu0 }
 0x119   : > { %686 = vst [vmem:[%s998_s6 + $0x68] sm:$0xff] %v668_v27  ;;  %v669_v29 = vadd.f32 %v642_v59, %v528_v28  ;;  %v529_v30 = vadd.f32 %v503_v60, %v381_v58  ;;  %v644_v62 = vpop.f32.mrf.mxu1 }
 0x11a   : > { %v507_v63 = vpop.f32.mrf.mxu0 }
 0x11b   : > { %687 = vst [vmem:[%s998_s6 + $0x70] sm:$0xff] %v669_v29  ;;  %v670_v31 = vadd.f32 %v644_v62, %v529_v30  ;;  %v530_v32 = vadd.f32 %v507_v63, %v385_v61  ;;  %v648_v1 = vpop.f32.mrf.mxu1 }
 0x11c   : > { %v509_v3 = vpop.f32.mrf.mxu0 }
 0x11d   : > { %688 = vst [vmem:[%s998_s6 + $0x78] sm:$0xff] %v670_v31  ;;  %v671_v4 = vadd.f32 %v648_v1, %v530_v32  ;;  %v531_v5 = vadd.f32 %v509_v3, %v387_v0  ;;  %v650_v6 = vpop.f32.mrf.mxu1 }
 0x11e   : > { %v511_v33 = vpop.f32.mrf.mxu0 }
 0x11f   : > { %689 = vst [vmem:[%s998_s6 + $0x80] sm:$0x1] %v671_v4  ;;  %v672_v34 = vadd.f32 %v650_v6, %v531_v5  ;;  %v652_v7 = vpop.f32.mrf.mxu1 }
 0x120   : > { %v512_v8 = vpop.f32.mrf.mxu0 }
 0x121   : > { %690 = vst [vmem:[%s998_s6 + $0x88] sm:$0x1] %v672_v34  ;;  %v653_v9 = vpop.f32.mrf.mxu1 }
 0x122 PF: > { %s12_s9 = sadd.s32 1, %s818_s9  }
 0x123   : > { %p9_p4 = scmp.ge.s32.totalorder %s12_s9, 6  }
 0x125   :  { %11 = sbr.rel (!%p9_p4) target bundleno = 1 (0x1), region = 61 }

</bundles_post_ra>
